<compile_context>
chip_gen: v6e
topology: v6e:2x2x1
jax: 0.10.0
libtpu: 0.0.40
codegen_flags: <defaults>
</compile_context>

<pallas_src>
import numpy as np
import jax
import jax.numpy as jnp
from jax.experimental import pallas as pl
from jax.experimental.pallas import tpu as pltpu

INPUT_DIM = 3
INV_SQRT3 = float(1.0 / np.sqrt(3.0))


def _soc3_kernel(sc_ref, x_ref, o_ref):
    # sc_ref: (3,) f32 in SMEM = [angle_tan, 1/angle_tan, 1/(angle_tan^2 + 1)]
    angle_tan = sc_ref[0]
    inv_at = sc_ref[1]
    inv_denom = sc_ref[2]

    # x_ref / o_ref: (3, TB, TG) — one (TB, TG) plane per cone component.
    x0 = x_ref[0]
    x1 = x_ref[1]
    x2 = x_ref[2]

    # s = (1/sqrt(3)) * sum over the 3 components
    s = (x0 + x1 + x2) * INV_SQRT3
    s_div = s * INV_SQRT3
    y0 = x0 - s_div
    y1 = x1 - s_div
    y2 = x2 - s_div

    # vector 3-norm: (|y0|^3 + |y1|^3 + |y2|^3)^(1/3); |y|^3 = (y*y)*|y|
    t = (y0 * y0) * jnp.abs(y0) + (y1 * y1) * jnp.abs(y1) + (y2 * y2) * jnp.abs(y2)
    # cube root via exp/log (EUP slot), guarded so t == 0 -> 0
    y_norm = jnp.where(
        t > 0.0, jnp.exp(jnp.log(jnp.maximum(t, 1e-38)) * (1.0 / 3.0)), 0.0
    )

    s_at = s * angle_tan
    # s * (1/angle_tan) is numerically the same quantity as s / angle_tan,
    # so this is sign-safe (no inequality flip) even if angle_tan < 0.
    mask1 = jnp.logical_and(s * inv_at > -y_norm, s_at < y_norm)
    mask2 = y_norm <= s_at

    s1 = (s + y_norm * angle_tan) * inv_denom
    coeff = (s1 * angle_tan) / (y_norm + 1e-9)
    base = s1 * INV_SQRT3

    r0 = base + coeff * y0
    r1 = base + coeff * y1
    r2 = base + coeff * y2

    # mask1 and mask2 are mutually exclusive (s*at < y_norm vs y_norm <= s*at),
    # so m1*r + m2*x == select chain (both false -> 0, matching the reference).
    zero = jnp.zeros_like(x0)
    o_ref[0] = jnp.where(mask2, x0, jnp.where(mask1, r0, zero))
    o_ref[1] = jnp.where(mask2, x1, jnp.where(mask1, r1, zero))
    o_ref[2] = jnp.where(mask2, x2, jnp.where(mask1, r2, zero))


def _ceil_to(n, m):
    return ((n + m - 1) // m) * m


def soc_3dim_forward(x, angle_tan_param):
    """x: (B, C) float32.  angle_tan_param: scalar parameter (init 0.0)."""
    B, C = x.shape
    rem = C % INPUT_DIM
    if rem == 1:
        zeros = jnp.zeros((B, 1), x.dtype)
        xr = jnp.concatenate([zeros, x, zeros], axis=1)
    elif rem == 2:
        xr = jnp.concatenate([x, jnp.zeros((B, 1), x.dtype)], axis=1)
    else:
        xr = x

    G = xr.shape[1] // INPUT_DIM

    # Tile selection: TB multiple of 8, TG multiple of 128; pad so the grid
    # divides evenly (edge padding is zeros and is sliced off afterwards).
    TB = 256 if B >= 256 else _ceil_to(B, 8)
    TG = 512 if G >= 512 else _ceil_to(G, 128)
    B_pad = _ceil_to(B, TB)
    G_pad = _ceil_to(G, TG)

    # Single de-interleave copy: (B, 3G) -> (3, B, G), zero-padded.
    # TODO(synk): fold this stride-3 split into the kernel (strided lane DMA)
    # to remove the remaining HBM round trip.
    x_t = jnp.transpose(xr.reshape(B, G, INPUT_DIM), (2, 0, 1))
    x_t = jnp.pad(x_t, ((0, 0), (0, B_pad - B), (0, G_pad - G)))

    angle_tan = jnp.asarray(angle_tan_param, jnp.float32) + 1.19
    scalars = jnp.stack(
        [angle_tan, 1.0 / angle_tan, 1.0 / (angle_tan * angle_tan + 1.0)]
    ).astype(jnp.float32)

    grid = (B_pad // TB, G_pad // TG)
    blk = pl.BlockSpec((INPUT_DIM, TB, TG), lambda i, j: (0, i, j))

    out_t = pl.pallas_call(
        _soc3_kernel,
        grid=grid,
        in_specs=[
            pl.BlockSpec(memory_space=pltpu.SMEM),  # hoisted angle_tan scalars
            blk,
        ],
        out_specs=blk,
        out_shape=jax.ShapeDtypeStruct((INPUT_DIM, B_pad, G_pad), x.dtype),
        compiler_params=pltpu.CompilerParams(
            dimension_semantics=("parallel", "parallel"),
        ),
    )(scalars, x_t)

    # Re-interleave: (3, B, G) -> (B, G, 3) -> (B, 3G)
    res = jnp.transpose(out_t[:, :B, :G], (1, 2, 0)).reshape(B, INPUT_DIM * G)
    if rem == 1:
        return res[:, 1:-1]
    elif rem == 2:
        return res[:, :-1]
    return res


def _reference_forward(x, angle_tan_param):
    """Pure-numpy reference mirroring the PyTorch module."""
    x = np.asarray(x, np.float32)
    B, C = x.shape
    rem = C % INPUT_DIM
    if rem == 1:
        xr = np.concatenate([np.zeros((B, 1), np.float32), x,
                             np.zeros((B, 1), np.float32)], axis=1)
    elif rem == 2:
        xr = np.concatenate([x, np.zeros((B, 1), np.float32)], axis=1)
    else:
        xr = x.copy()
    G = xr.shape[1] // INPUT_DIM
    xr3 = xr.reshape(B, G, INPUT_DIM)
    s = np.sum(xr3, axis=2) / np.sqrt(INPUT_DIM)
    y = xr3 - s[..., None] / np.sqrt(INPUT_DIM)
    angle_tan = float(angle_tan_param) + 1.19
    y_norm = np.sum(np.abs(y) ** 3, axis=2) ** (1.0 / 3.0)  # ord-3 norm
    mask1 = np.logical_and(s / angle_tan > -y_norm, s * angle_tan < y_norm)
    mask2 = y_norm <= s * angle_tan
    s1 = (s + y_norm * angle_tan) / (angle_tan ** 2 + 1)
    coeff = s1 / (y_norm + 1e-9) * angle_tan
    y1 = coeff[..., None] * y
    x_result = s1[..., None] / np.sqrt(INPUT_DIM) + y1
    x_result2 = mask1[..., None] * x_result + mask2[..., None] * xr3
    flat = x_result2.reshape(B, INPUT_DIM * G)
    if rem == 1:
        return flat[:, 1:-1]
    elif rem == 2:
        return flat[:, :-1]
    return flat


if __name__ == "__main__":
    key = jax.random.PRNGKey(0)
    B, C = 4, 12  # C % 3 == 0 path
    x = jax.random.normal(key, (B, C), dtype=jnp.float32)

    # Parameter: nn.Parameter(torch.tensor([0.0])) -> deterministic init 0.0
    angle_tan_param = jnp.zeros((), jnp.float32)

    fwd = jax.jit(soc_3dim_forward)
    out = jax.block_until_ready(fwd(x, angle_tan_param))
    ref = _reference_forward(np.asarray(x), 0.0)
    assert out.shape == (B, C), f"bad shape {out.shape}"
    assert np.allclose(np.asarray(out), ref, rtol=1e-5, atol=1e-5), "mismatch vs reference"

    # Exercise the C % 3 == 2 zero-padding path as well.
    x2 = jax.random.normal(jax.random.PRNGKey(1), (B, 14), dtype=jnp.float32)
    out2 = jax.block_until_ready(fwd(x2, angle_tan_param))
    ref2 = _reference_forward(np.asarray(x2), 0.0)
    assert out2.shape == (B, 14), f"bad shape {out2.shape}"
    assert np.allclose(np.asarray(out2), ref2, rtol=1e-5, atol=1e-5), "mismatch vs reference"

    print("KERNEL_OK")
</pallas_src>

<mosaic_0001>
module attributes {stable_mosaic.version = 11 : i64} {
  func.func @_soc3_kernel(%arg0: i32, %arg1: i32, %arg2: memref<3xf32, #tpu.memory_space<smem>>, %arg3: memref<3x8x128xf32, #tpu.memory_space<vmem>>, %arg4: memref<3x8x128xf32, #tpu.memory_space<vmem>>) attributes {dimension_semantics = [#tpu.dimension_semantics<parallel>, #tpu.dimension_semantics<parallel>], iteration_bounds = array<i64: 1, 1>, scalar_prefetch = 0 : i64, scratch_operands = 0 : i64, tpu.core_type = #tpu.core_type<tc>, window_params = [{transform_indices = @transform_0, window_bounds = array<i64: 3>}, {transform_indices = @transform_1, window_bounds = array<i64: 3, 8, 128>}, {transform_indices = @transform_2, window_bounds = array<i64: 3, 8, 128>}]} {
    %c0 = arith.constant 0 : index
    %0 = memref.load %arg2[%c0] : memref<3xf32, #tpu.memory_space<smem>>
    %c1 = arith.constant 1 : index
    %1 = memref.load %arg2[%c1] : memref<3xf32, #tpu.memory_space<smem>>
    %c2 = arith.constant 2 : index
    %2 = memref.load %arg2[%c2] : memref<3xf32, #tpu.memory_space<smem>>
    %c0_0 = arith.constant 0 : index
    %c0_1 = arith.constant 0 : index
    %c0_2 = arith.constant 0 : index
    %3 = vector.load %arg3[%c0_0, %c0_1, %c0_2] : memref<3x8x128xf32, #tpu.memory_space<vmem>>, vector<1x8x128xf32>
    %4 = vector.shape_cast %3 : vector<1x8x128xf32> to vector<8x128xf32>
    %c1_3 = arith.constant 1 : index
    %c0_4 = arith.constant 0 : index
    %c0_5 = arith.constant 0 : index
    %5 = vector.load %arg3[%c1_3, %c0_4, %c0_5] : memref<3x8x128xf32, #tpu.memory_space<vmem>>, vector<1x8x128xf32>
    %6 = vector.shape_cast %5 : vector<1x8x128xf32> to vector<8x128xf32>
    %c2_6 = arith.constant 2 : index
    %c0_7 = arith.constant 0 : index
    %c0_8 = arith.constant 0 : index
    %7 = vector.load %arg3[%c2_6, %c0_7, %c0_8] : memref<3x8x128xf32, #tpu.memory_space<vmem>>, vector<1x8x128xf32>
    %8 = vector.shape_cast %7 : vector<1x8x128xf32> to vector<8x128xf32>
    %9 = arith.addf %4, %6 : vector<8x128xf32>
    %10 = arith.addf %9, %8 : vector<8x128xf32>
    %cst = arith.constant 0.577350259 : f32
    %11 = vector.broadcast %cst : f32 to vector<8x128xf32>
    %12 = arith.mulf %10, %11 : vector<8x128xf32>
    %cst_9 = arith.constant 0.577350259 : f32
    %13 = vector.broadcast %cst_9 : f32 to vector<8x128xf32>
    %14 = arith.mulf %12, %13 : vector<8x128xf32>
    %15 = arith.subf %4, %14 : vector<8x128xf32>
    %16 = arith.subf %6, %14 : vector<8x128xf32>
    %17 = arith.subf %8, %14 : vector<8x128xf32>
    %18 = arith.mulf %15, %15 : vector<8x128xf32>
    %19 = math.absf %15 : vector<8x128xf32>
    %20 = arith.mulf %18, %19 : vector<8x128xf32>
    %21 = arith.mulf %16, %16 : vector<8x128xf32>
    %22 = math.absf %16 : vector<8x128xf32>
    %23 = arith.mulf %21, %22 : vector<8x128xf32>
    %24 = arith.addf %20, %23 : vector<8x128xf32>
    %25 = arith.mulf %17, %17 : vector<8x128xf32>
    %26 = math.absf %17 : vector<8x128xf32>
    %27 = arith.mulf %25, %26 : vector<8x128xf32>
    %28 = arith.addf %24, %27 : vector<8x128xf32>
    %cst_10 = arith.constant 0.000000e+00 : f32
    %29 = vector.broadcast %cst_10 : f32 to vector<8x128xf32>
    %30 = arith.cmpf ogt, %28, %29 : vector<8x128xf32>
    %cst_11 = arith.constant 9.99999935E-39 : f32
    %31 = vector.broadcast %cst_11 : f32 to vector<8x128xf32>
    %32 = arith.maximumf %28, %31 : vector<8x128xf32>
    %33 = math.log %32 : vector<8x128xf32>
    %cst_12 = arith.constant 0.333333343 : f32
    %34 = vector.broadcast %cst_12 : f32 to vector<8x128xf32>
    %35 = arith.mulf %33, %34 : vector<8x128xf32>
    %36 = math.exp %35 : vector<8x128xf32>
    %cst_13 = arith.constant 0.000000e+00 : f32
    %37 = vector.broadcast %cst_13 : f32 to vector<8x128xf32>
    %38 = arith.select %30, %36, %37 : vector<8x128xi1>, vector<8x128xf32>
    %39 = vector.broadcast %0 : f32 to vector<8x128xf32>
    %40 = arith.mulf %12, %39 : vector<8x128xf32>
    %41 = vector.broadcast %1 : f32 to vector<8x128xf32>
    %42 = arith.mulf %12, %41 : vector<8x128xf32>
    %cst_14 = arith.constant 0.000000e+00 : f32
    %43 = vector.broadcast %cst_14 : f32 to vector<8x128xf32>
    %44 = arith.subf %43, %38 : vector<8x128xf32>
    %45 = arith.cmpf ogt, %42, %44 : vector<8x128xf32>
    %46 = arith.cmpf olt, %40, %38 : vector<8x128xf32>
    %47 = arith.andi %45, %46 : vector<8x128xi1>
    %48 = arith.cmpf ole, %38, %40 : vector<8x128xf32>
    %49 = vector.broadcast %0 : f32 to vector<8x128xf32>
    %50 = arith.mulf %38, %49 : vector<8x128xf32>
    %51 = arith.addf %12, %50 : vector<8x128xf32>
    %52 = vector.broadcast %2 : f32 to vector<8x128xf32>
    %53 = arith.mulf %51, %52 : vector<8x128xf32>
    %54 = vector.broadcast %0 : f32 to vector<8x128xf32>
    %55 = arith.mulf %53, %54 : vector<8x128xf32>
    %cst_15 = arith.constant 9.99999971E-10 : f32
    %56 = vector.broadcast %cst_15 : f32 to vector<8x128xf32>
    %57 = arith.addf %38, %56 : vector<8x128xf32>
    %58 = arith.divf %55, %57 : vector<8x128xf32>
    %cst_16 = arith.constant 0.577350259 : f32
    %59 = vector.broadcast %cst_16 : f32 to vector<8x128xf32>
    %60 = arith.mulf %53, %59 : vector<8x128xf32>
    %61 = arith.mulf %58, %15 : vector<8x128xf32>
    %62 = arith.addf %60, %61 : vector<8x128xf32>
    %63 = arith.mulf %58, %16 : vector<8x128xf32>
    %64 = arith.addf %60, %63 : vector<8x128xf32>
    %65 = arith.mulf %58, %17 : vector<8x128xf32>
    %66 = arith.addf %60, %65 : vector<8x128xf32>
    %cst_17 = arith.constant 0.000000e+00 : f32
    %67 = vector.broadcast %cst_17 : f32 to vector<8x128xf32>
    %68 = arith.select %47, %62, %67 : vector<8x128xi1>, vector<8x128xf32>
    %69 = arith.select %48, %4, %68 : vector<8x128xi1>, vector<8x128xf32>
    %c0_18 = arith.constant 0 : index
    %c0_19 = arith.constant 0 : index
    %c0_20 = arith.constant 0 : index
    %70 = vector.load %arg4[%c0_18, %c0_19, %c0_20] : memref<3x8x128xf32, #tpu.memory_space<vmem>>, vector<1x8x128xf32>
    %71 = vector.shape_cast %70 : vector<1x8x128xf32> to vector<8x128xf32>
    %72 = vector.shape_cast %69 : vector<8x128xf32> to vector<1x8x128xf32>
    tpu.vector_store %arg4[%c0_18, %c0_19, %c0_20], %72 {strides = array<i32>} : memref<3x8x128xf32, #tpu.memory_space<vmem>>, vector<1x8x128xf32>,
    %73 = arith.select %47, %64, %67 : vector<8x128xi1>, vector<8x128xf32>
    %74 = arith.select %48, %6, %73 : vector<8x128xi1>, vector<8x128xf32>
    %c1_21 = arith.constant 1 : index
    %c0_22 = arith.constant 0 : index
    %c0_23 = arith.constant 0 : index
    %75 = vector.load %arg4[%c1_21, %c0_22, %c0_23] : memref<3x8x128xf32, #tpu.memory_space<vmem>>, vector<1x8x128xf32>
    %76 = vector.shape_cast %75 : vector<1x8x128xf32> to vector<8x128xf32>
    %77 = vector.shape_cast %74 : vector<8x128xf32> to vector<1x8x128xf32>
    tpu.vector_store %arg4[%c1_21, %c0_22, %c0_23], %77 {strides = array<i32>} : memref<3x8x128xf32, #tpu.memory_space<vmem>>, vector<1x8x128xf32>,
    %78 = arith.select %47, %66, %67 : vector<8x128xi1>, vector<8x128xf32>
    %79 = arith.select %48, %8, %78 : vector<8x128xi1>, vector<8x128xf32>
    %c2_24 = arith.constant 2 : index
    %c0_25 = arith.constant 0 : index
    %c0_26 = arith.constant 0 : index
    %80 = vector.load %arg4[%c2_24, %c0_25, %c0_26] : memref<3x8x128xf32, #tpu.memory_space<vmem>>, vector<1x8x128xf32>
    %81 = vector.shape_cast %80 : vector<1x8x128xf32> to vector<8x128xf32>
    %82 = vector.shape_cast %79 : vector<8x128xf32> to vector<1x8x128xf32>
    tpu.vector_store %arg4[%c2_24, %c0_25, %c0_26], %82 {strides = array<i32>} : memref<3x8x128xf32, #tpu.memory_space<vmem>>, vector<1x8x128xf32>,
    return
  }
  func.func @transform_0(%arg0: i32, %arg1: i32) -> i32 {
    %c0_i32 = arith.constant 0 : i32
    %c0_i32_0 = arith.constant 0 : i32
    return %c0_i32 : i32
  }
  func.func @transform_1(%arg0: i32, %arg1: i32) -> (i32, i32, i32) {
    %c0_i32 = arith.constant 0 : i32
    %c0_i32_0 = arith.constant 0 : i32
    return %c0_i32, %arg0, %arg1 : i32, i32, i32
  }
  func.func @transform_2(%arg0: i32, %arg1: i32) -> (i32, i32, i32) {
    %c0_i32 = arith.constant 0 : i32
    %c0_i32_0 = arith.constant 0 : i32
    return %c0_i32, %arg0, %arg1 : i32, i32, i32
  }
}

</mosaic_0001>

<bundles_post_ra>
// kernel: soc_3dim_forward.1
= control target key start
LH: loop header
LB: loop body
LE: loop exit
PB: predicated region body
PF: predicated region fallthrough
CT: control target
= control target key end

     0   :  { %7 = vsyncpa [#allocation3], 0  ;;  %s177_s0 = inlined_call_operand.vmem [shape: f32[3], index: 0, kind: input, shape index: {}]   ;;  %s178_s1 = inlined_call_operand.vmem [shape: f32[3,8,128], index: 1, kind: input, shape index: {}]   ;;  %s179_s2 = inlined_call_operand.vmem [shape: f32[3,8,128], index: 2, kind: output, shape index: {}]  }
   0x1   :  { %s14_s11 = sshll.u32 %s177_s0, 4  ;;  %s15_s11 = int_to_ptr.vmem [resolvable:$true] %s14_s11 }
   0x2   :  { %s111_s12 = scalar_lea.vmem %s15_s11, 16  ;;  %p116_p1 = scmp.lt.s32.totalorder %s15_s11, %s15_s11 }
   0x3   :  { %p112_p0 = scmp.ne.s32.totalorder %s15_s11, %s111_s12  ;;  %p117_p2 = scmp.lt.s32.totalorder %s111_s12, %s111_s12 }
   0x5   :  { %p118_p3 = por %p117_p2, %p116_p1 }
   0x7   :  { %p119_p4 = pnand %p118_p3, %p112_p0 }
   0x9   :  { %122 = shalt.err (!%p119_p4)
}
   0xa   :  { %s125_s13 = smov [#allocation2]  }
   0xb   :  { %17 = dma.vmem_to_smem %s15_s11, 16, %s125_s13, [#allocation3]  }
   0xc   :  { %123 = dma.done.wait [#allocation3], 16  }
   0xd   :  { %124 = vsyncadd [#allocation3], 4294967280 }
   0xe   :  { %23 = sfence }
   0xf   :  { %v147_v0 = vld [vmem:[%s178_s1] sm:$0xff]  ;;  %v152_v1 = vld [vmem:[%s178_s1 + $0x8] sm:$0xff]  ;;  %v157_v2 = vld [vmem:[%s178_s1 + $0x10] sm:$0xff]  ;;  %s24_s1 = sld [smem:[#allocation2]] }
  0x10   :  { %v32_v3 = vadd.f32 %v152_v1, %v147_v0  ;;  %s99_s19 = sld [smem:[#allocation2 + $0x2]] }
  0x11   :  { %s98_s20 = sld [smem:[#allocation2 + $0x1]] }
  0x12   :  { %v33_v4 = vadd.f32 %v157_v2, %v32_v3 }
  0x14   :  { %v34_v5 = vmul.f32 0.57735026, %v33_v4 }
  0x15   :  { %v58_v27 = vstv %s24_s1 }
  0x16   :  { %v35_v6 = vmul.f32 0.57735026, %v34_v5  ;;  %v69_v32 = vstv %s99_s19  ;;  %v59_v35 = vmul.f32 %v58_v27, %v34_v5 }
  0x17   :  { %v60_v34 = vstv %s98_s20 }
  0x18   :  { %v36_v7 = vsub.f32 %v147_v0, %v35_v6  ;;  %v37_v8 = vsub.f32 %v152_v1, %v35_v6  ;;  %v38_v9 = vsub.f32 %v157_v2, %v35_v6  ;;  %v61_v36 = vmul.f32 %v60_v34, %v34_v5 }
  0x1a   :  { %v39_v10 = vmul.f32 %v36_v7, %v36_v7  ;;  %v40_v11 = vand.u32 2147483647, %v36_v7  ;;  %v42_v12 = vmul.f32 %v37_v8, %v37_v8  ;;  %v43_v13 = vand.u32 2147483647, %v37_v8 }
  0x1b   :  { %v46_v14 = vmul.f32 %v38_v9, %v38_v9  ;;  %v47_v15 = vand.u32 2147483647, %v38_v9 }
  0x1c   :  { %v41_v16 = vmul.f32 %v40_v11, %v39_v10  ;;  %v44_v17 = vmul.f32 %v43_v13, %v42_v12 }
  0x1d   :  { %v48_v18 = vmul.f32 %v47_v15, %v46_v14 }
  0x1e   :  { %v45_v19 = vadd.f32 %v44_v17, %v41_v16 }
  0x20   :  { %v49_v20 = vadd.f32 %v48_v18, %v45_v19 }
  0x22   :  { %v51_v21 = vmax.f32 %v49_v20, 1e-38  ;;  %vm50_vm0 = vcmp.gt.f32.partialorder %v49_v20, 0.0 }
  0x24   :  { %105 = vlog2.f32 %v51_v21 }
  0x31   :  { %v106_v22 = vpop.eup %105 }
  0x32   :  { %v53_v23 = vmul.f32 0.6931472, %v106_v22 }
  0x34   :  { %v54_v24 = vmul.f32 0.33333334, %v53_v23 }
  0x36   :  { %v55_v25 = vmul.f32 1.442695, %v54_v24 }
  0x38   :  { %107 = vpow2.f32 %v55_v25 }
  0x45   :  { %v108_v26 = vpop.eup %107 }
  0x46   :  { %v57_v28 = vsel %vm50_vm0, %v108_v26, 0.0 }
  0x47   :  { %v67_v29 = vmul.f32 %v58_v27, %v57_v28  ;;  %v72_v30 = vadd.f32 1e-09, %v57_v28  ;;  %v62_v37 = vsub.f32 0.0, %v57_v28  ;;  %vm64_vm2 = vcmp.lt.f32.partialorder %v59_v35, %v57_v28 }
  0x48   :  { %vm66_vm4 = vcmp.le.f32.partialorder %v57_v28, %v59_v35 }
  0x49   :  { %109 = vrcp.f32 %v72_v30  ;;  %v68_v31 = vadd.f32 %v67_v29, %v34_v5  ;;  %vm63_vm1 = vcmp.gt.f32.partialorder %v61_v36, %v62_v37 }
  0x4a   :  { %vm65_vm3 = vmand %vm63_vm1, %vm64_vm2 }
  0x4b   :  { %v70_v33 = vmul.f32 %v69_v32, %v68_v31 }
  0x4d   :  { %v71_v38 = vmul.f32 %v70_v33, %v58_v27  ;;  %v75_v41 = vmul.f32 0.57735026, %v70_v33 }
  0x56   :  { %v110_v39 = vpop.eup %109 }
  0x57   :  { %v74_v40 = vmul.f32 %v110_v39, %v71_v38 }
  0x59   :  { %v76_v42 = vmul.f32 %v74_v40, %v36_v7  ;;  %v78_v43 = vmul.f32 %v74_v40, %v37_v8  ;;  %v80_v44 = vmul.f32 %v74_v40, %v38_v9 }
  0x5b   :  { %v77_v45 = vadd.f32 %v76_v42, %v75_v41  ;;  %v79_v46 = vadd.f32 %v78_v43, %v75_v41  ;;  %v81_v47 = vadd.f32 %v80_v44, %v75_v41 }
  0x5d   :  { %v82_v48 = vsel %vm65_vm3, %v77_v45, 0.0  ;;  %v85_v49 = vsel %vm65_vm3, %v79_v46, 0.0  ;;  %v89_v50 = vsel %vm65_vm3, %v81_v47, 0.0 }
  0x5e   :  { %v83_v51 = vsel %vm66_vm4, %v147_v0, %v82_v48  ;;  %v86_v52 = vsel %vm66_vm4, %v152_v1, %v85_v49  ;;  %v90_v53 = vsel %vm66_vm4, %v157_v2, %v89_v50 }
  0x5f   :  { %84 = vst [vmem:[%s179_s2] sm:$0xff] %v83_v51  ;;  %102 = vst [vmem:[%s179_s2 + $0x8] sm:$0xff] %v86_v52 }
  0x60   :  { %103 = vst [vmem:[%s179_s2 + $0x10] sm:$0xff] %v90_v53 }
  0x61   :  { %97 = vsyncpa [#allocation3], 1 }

</bundles_post_ra>
